<compile_context>
chip_gen: v5e
topology: v5e:2x2
jax: 0.10.0
libtpu: 0.0.40
codegen_flags: <defaults>
</compile_context>

<pallas_src>
import functools

import jax
import jax.numpy as jnp
from jax.experimental import pallas as pl
from jax.experimental.pallas import tpu as pltpu

MIN_VAR = 1e-3  # matches module default min_var=0.001
# TODO(synk): Dropout(p=0.4) is implemented as eval-mode identity; training-mode
# stochastic masking would need pltpu.prng_seed / pltpu.prng_random_bits.


def encoder_kernel(x_ref, w1_ref, b1_ref, w2_ref, b2_ref, wh_ref, bh_ref,
                   mean_ref, var_ref, cov_ref, *, state_dim):
    S = state_dim

    # In-kernel bf16 cast (VPU) of the f32 observation block; hides under the
    # matmul and avoids a separate wrapper-side HBM cast pass.
    # Precision note: bf16 MXU inputs give ~1e-2 relative error vs f32 torch;
    # accumulation stays f32 via preferred_element_type.
    x = x_ref[...].astype(jnp.bfloat16)                         # [TB, OBS]

    # mlp_layers: Linear -> ReLU -> Dropout(id) -> Linear -> ReLU -> Dropout(id)
    h1 = jnp.dot(x, w1_ref[...], preferred_element_type=jnp.float32) + b1_ref[...]
    h1 = jnp.maximum(h1, 0.0)                                    # f32 [TB, HID]
    h2 = jnp.dot(h1.astype(jnp.bfloat16), w2_ref[...],
                 preferred_element_type=jnp.float32) + b2_ref[...]
    h2 = jnp.maximum(h2, 0.0)                                    # f32 [TB, HID]

    # Fused heads: one GEMM producing [mean | pre-softplus var] on the lanes.
    head = jnp.dot(h2.astype(jnp.bfloat16), wh_ref[...],
                   preferred_element_type=jnp.float32) + bh_ref[...]  # [TB, 2S]

    mean = head[:, :S]
    v = head[:, S:]
    # Numerically stable softplus + min_var.
    # NOTE: when B % TB != 0 the padded edge rows run exp/log1p on
    # uninitialized data; harmless on TPU (no FP traps) and masked on store.
    var = jnp.maximum(v, 0.0) + jnp.log1p(jnp.exp(-jnp.abs(v))) + MIN_VAR

    mean_ref[...] = mean
    var_ref[...] = var

    # Fused diag-embed: cov_flat[b, i*S + j] = var[b, i] if i == j else 0.
    # Built as one small MXU dot against an iota-constructed one-hot scatter
    # matrix -> lane-packed [TB, S*S] store, no wrapper-side zeros+scatter.
    row = jax.lax.broadcasted_iota(jnp.int32, (S, S * S), 0)
    col = jax.lax.broadcasted_iota(jnp.int32, (S, S * S), 1)
    scatter = (col == row * (S + 1)).astype(jnp.float32)         # [S, S*S]
    cov_ref[...] = jnp.dot(var, scatter, preferred_element_type=jnp.float32)


def _round_up(a, m):
    return (a + m - 1) // m * m


def encoder_forward(x, params, *, block_b=1024):
    """Returns (mean [B,S], var [B,S], cov [B,S,S])."""
    B, OBS = x.shape
    HID = params["w1"].shape[1]
    S = params["wm"].shape[1]

    # Fuse the two heads into one GEMM: W_head = [wm | wv], b_head = [bm | bv].
    w_head = jnp.concatenate([params["wm"], params["wv"]], axis=1)   # [HID, 2S]
    b_head = jnp.concatenate([params["bm"], params["bv"]], axis=1)   # [1, 2S]

    # Weights cast to bf16 (MXU-native inputs; tiny, VMEM-resident); biases f32.
    w1 = params["w1"].astype(jnp.bfloat16)
    w2 = params["w2"].astype(jnp.bfloat16)
    wh = w_head.astype(jnp.bfloat16)
    b1 = params["b1"].astype(jnp.float32)
    b2 = params["b2"].astype(jnp.float32)
    bh = b_head.astype(jnp.float32)

    # Batch tile: large enough to amortize per-step overhead, sublane-aligned,
    # and capped near ceil(B/2) so the "parallel" batch axis has >=2 grid
    # steps to shard across v7x's two TensorCores whenever B allows.
    half = _round_up(pl.cdiv(B, 2), 8)
    tb = max(8, min(block_b, half))
    grid = (pl.cdiv(B, tb),)

    resident = lambda shape: pl.BlockSpec(shape, lambda i: (0,) * len(shape))
    batch_tiled = lambda last: pl.BlockSpec((tb, last), lambda i: (i, 0))

    mean, var, cov_flat = pl.pallas_call(
        functools.partial(encoder_kernel, state_dim=S),
        out_shape=(
            jax.ShapeDtypeStruct((B, S), jnp.float32),
            jax.ShapeDtypeStruct((B, S), jnp.float32),
            jax.ShapeDtypeStruct((B, S * S), jnp.float32),
        ),
        grid_spec=pltpu.PrefetchScalarGridSpec(
            num_scalar_prefetch=0,
            grid=grid,
            in_specs=[
                batch_tiled(OBS),                         # x: tiled over batch
                resident(w1.shape), resident(b1.shape),   # weights/biases stay
                resident(w2.shape), resident(b2.shape),   # VMEM-resident across
                resident(wh.shape), resident(bh.shape),   # all grid steps
            ],
            out_specs=[
                batch_tiled(S),        # mean
                batch_tiled(S),        # var
                batch_tiled(S * S),    # cov (lane-packed, 64 lanes at S=8)
            ],
        ),
        compiler_params=pltpu.CompilerParams(
            dimension_semantics=("parallel",),
            vmem_limit_bytes=48 * 1024 * 1024,
        ),
    )(x, w1, b1, w2, b2, wh, bh)

    # Row-major [B, S*S] -> [B, S, S] reshape is a free bitcast (no HBM pass).
    cov = cov_flat.reshape(B, S, S)
    return mean, var, cov


def _reference_forward(x, params):
    """Pure-JAX f32 reference for a loose numerical check."""
    h1 = jnp.maximum(x @ params["w1"] + params["b1"], 0.0)
    h2 = jnp.maximum(h1 @ params["w2"] + params["b2"], 0.0)
    mean = h2 @ params["wm"] + params["bm"]
    v = h2 @ params["wv"] + params["bv"]
    var = jnp.maximum(v, 0.0) + jnp.log1p(jnp.exp(-jnp.abs(v))) + MIN_VAR
    cov = jax.vmap(jnp.diag)(var)
    return mean, var, cov


def init_linear(key, fan_in, fan_out):
    """Deterministic init mimicking nn.Linear default U(-1/sqrt(fan_in), ...)."""
    kw, kb = jax.random.split(key)
    bound = 1.0 / jnp.sqrt(float(fan_in))
    w = jax.random.uniform(kw, (fan_in, fan_out), jnp.float32, -bound, bound)
    b = jax.random.uniform(kb, (1, fan_out), jnp.float32, -bound, bound)
    return w, b


if __name__ == "__main__":
    # Small shapes consistent with the module: obs_dim=16 -> hidden_dim=32
    # (2*obs), state_dim=8, batch=8.
    B, OBS, HID, STATE = 8, 16, 32, 8

    key = jax.random.PRNGKey(0)
    kx, k1, k2, km, kv = jax.random.split(key, 5)

    x = jax.random.normal(kx, (B, OBS), jnp.float32)

    w1, b1 = init_linear(k1, OBS, HID)
    w2, b2 = init_linear(k2, HID, HID)
    wm, bm = init_linear(km, HID, STATE)
    wv, bv = init_linear(kv, HID, STATE)
    params = dict(w1=w1, b1=b1, w2=w2, b2=b2, wm=wm, bm=bm, wv=wv, bv=bv)

    mean, var, cov = encoder_forward(x, params)
    jax.block_until_ready((mean, var, cov))

    # Sanity: shapes, positivity of variance, loose agreement with f32
    # reference (matmul inputs are bf16, so tolerances are generous).
    assert mean.shape == (B, STATE)
    assert var.shape == (B, STATE)
    assert cov.shape == (B, STATE, STATE)
    assert bool(jnp.all(var > 0.0))

    ref_mean, ref_var, ref_cov = _reference_forward(x, params)
    assert bool(jnp.allclose(mean, ref_mean, atol=5e-2, rtol=5e-2))
    assert bool(jnp.allclose(var, ref_var, atol=5e-2, rtol=5e-2))
    # cov diagonal matches var, off-diagonal is exactly zero.
    idx = jnp.arange(STATE)
    assert bool(jnp.allclose(cov[:, idx, idx], var))
    off_diag_mask = 1.0 - jnp.eye(STATE)
    assert bool(jnp.all(cov * off_diag_mask == 0.0))
    assert bool(jnp.allclose(cov, ref_cov, atol=5e-2, rtol=5e-2))

    print("KERNEL_OK")
</pallas_src>

<mosaic_0001>
module attributes {stable_mosaic.version = 11 : i64} {
  func.func @encoder_kernel(%arg0: i32, %arg1: memref<8x16xf32, #tpu.memory_space<vmem>>, %arg2: memref<16x32xbf16, #tpu.memory_space<vmem>>, %arg3: memref<1x32xf32, #tpu.memory_space<vmem>>, %arg4: memref<32x32xbf16, #tpu.memory_space<vmem>>, %arg5: memref<1x32xf32, #tpu.memory_space<vmem>>, %arg6: memref<32x16xbf16, #tpu.memory_space<vmem>>, %arg7: memref<1x16xf32, #tpu.memory_space<vmem>>, %arg8: memref<8x8xf32, #tpu.memory_space<vmem>>, %arg9: memref<8x8xf32, #tpu.memory_space<vmem>>, %arg10: memref<8x64xf32, #tpu.memory_space<vmem>>) attributes {dimension_semantics = [#tpu.dimension_semantics<parallel>], iteration_bounds = array<i64: 1>, scalar_prefetch = 0 : i64, scratch_operands = 0 : i64, tpu.core_type = #tpu.core_type<tc>, window_params = [{transform_indices = @transform_0, window_bounds = array<i64: 8, 16>}, {pipeline_mode = #tpu.pipeline_mode<synchronous>, transform_indices = @transform_1, window_bounds = array<i64: 16, 32>}, {pipeline_mode = #tpu.pipeline_mode<synchronous>, transform_indices = @transform_2, window_bounds = array<i64: 1, 32>}, {pipeline_mode = #tpu.pipeline_mode<synchronous>, transform_indices = @transform_3, window_bounds = array<i64: 32, 32>}, {pipeline_mode = #tpu.pipeline_mode<synchronous>, transform_indices = @transform_4, window_bounds = array<i64: 1, 32>}, {pipeline_mode = #tpu.pipeline_mode<synchronous>, transform_indices = @transform_5, window_bounds = array<i64: 32, 16>}, {pipeline_mode = #tpu.pipeline_mode<synchronous>, transform_indices = @transform_6, window_bounds = array<i64: 1, 16>}, {transform_indices = @transform_7, window_bounds = array<i64: 8, 8>}, {transform_indices = @transform_8, window_bounds = array<i64: 8, 8>}, {transform_indices = @transform_9, window_bounds = array<i64: 8, 64>}]} {
    %c0 = arith.constant 0 : index
    %c0_0 = arith.constant 0 : index
    %0 = vector.load %arg1[%c0, %c0_0] : memref<8x16xf32, #tpu.memory_space<vmem>>, vector<8x16xf32>
    %1 = arith.truncf %0 : vector<8x16xf32> to vector<8x16xbf16>
    %c0_1 = arith.constant 0 : index
    %c0_2 = arith.constant 0 : index
    %2 = vector.load %arg2[%c0_1, %c0_2] : memref<16x32xbf16, #tpu.memory_space<vmem>>, vector<16x32xbf16>
    %cst = arith.constant dense<0.000000e+00> : vector<8x32xf32>
    %3 = tpu.matmul %1, %2, %cst {dimension_numbers = #tpu.dot_dimension_numbers<[1], [0], [0], [1], [0, 0, 1, 1], [], []>} : vector<8x16xbf16>, vector<16x32xbf16>, vector<8x32xf32> -> vector<8x32xf32>
    %c0_3 = arith.constant 0 : index
    %c0_4 = arith.constant 0 : index
    %4 = vector.load %arg3[%c0_3, %c0_4] : memref<1x32xf32, #tpu.memory_space<vmem>>, vector<1x32xf32>
    %5 = vector.broadcast %4 : vector<1x32xf32> to vector<8x32xf32>
    %6 = arith.addf %3, %5 : vector<8x32xf32>
    %cst_5 = arith.constant 0.000000e+00 : f32
    %7 = vector.broadcast %cst_5 : f32 to vector<8x32xf32>
    %8 = arith.maximumf %6, %7 : vector<8x32xf32>
    %9 = arith.truncf %8 : vector<8x32xf32> to vector<8x32xbf16>
    %c0_6 = arith.constant 0 : index
    %c0_7 = arith.constant 0 : index
    %10 = vector.load %arg4[%c0_6, %c0_7] : memref<32x32xbf16, #tpu.memory_space<vmem>>, vector<32x32xbf16>
    %cst_8 = arith.constant dense<0.000000e+00> : vector<8x32xf32>
    %11 = tpu.matmul %9, %10, %cst_8 {dimension_numbers = #tpu.dot_dimension_numbers<[1], [0], [0], [1], [0, 0, 1, 1], [], []>} : vector<8x32xbf16>, vector<32x32xbf16>, vector<8x32xf32> -> vector<8x32xf32>
    %c0_9 = arith.constant 0 : index
    %c0_10 = arith.constant 0 : index
    %12 = vector.load %arg5[%c0_9, %c0_10] : memref<1x32xf32, #tpu.memory_space<vmem>>, vector<1x32xf32>
    %13 = vector.broadcast %12 : vector<1x32xf32> to vector<8x32xf32>
    %14 = arith.addf %11, %13 : vector<8x32xf32>
    %cst_11 = arith.constant 0.000000e+00 : f32
    %15 = vector.broadcast %cst_11 : f32 to vector<8x32xf32>
    %16 = arith.maximumf %14, %15 : vector<8x32xf32>
    %17 = arith.truncf %16 : vector<8x32xf32> to vector<8x32xbf16>
    %c0_12 = arith.constant 0 : index
    %c0_13 = arith.constant 0 : index
    %18 = vector.load %arg6[%c0_12, %c0_13] : memref<32x16xbf16, #tpu.memory_space<vmem>>, vector<32x16xbf16>
    %cst_14 = arith.constant dense<0.000000e+00> : vector<8x16xf32>
    %19 = tpu.matmul %17, %18, %cst_14 {dimension_numbers = #tpu.dot_dimension_numbers<[1], [0], [0], [1], [0, 0, 1, 1], [], []>} : vector<8x32xbf16>, vector<32x16xbf16>, vector<8x16xf32> -> vector<8x16xf32>
    %c0_15 = arith.constant 0 : index
    %c0_16 = arith.constant 0 : index
    %20 = vector.load %arg7[%c0_15, %c0_16] : memref<1x16xf32, #tpu.memory_space<vmem>>, vector<1x16xf32>
    %21 = vector.broadcast %20 : vector<1x16xf32> to vector<8x16xf32>
    %22 = arith.addf %19, %21 : vector<8x16xf32>
    %23 = vector.extract_strided_slice %22 {offsets = [0, 0], sizes = [8, 8], strides = [1, 1]} : vector<8x16xf32> to vector<8x8xf32>
    %24 = vector.extract_strided_slice %22 {offsets = [0, 8], sizes = [8, 8], strides = [1, 1]} : vector<8x16xf32> to vector<8x8xf32>
    %cst_17 = arith.constant 0.000000e+00 : f32
    %25 = vector.broadcast %cst_17 : f32 to vector<8x8xf32>
    %26 = arith.maximumf %24, %25 : vector<8x8xf32>
    %27 = math.absf %24 : vector<8x8xf32>
    %cst_18 = arith.constant 0.000000e+00 : f32
    %28 = vector.broadcast %cst_18 : f32 to vector<8x8xf32>
    %29 = arith.subf %28, %27 : vector<8x8xf32>
    %30 = math.exp %29 : vector<8x8xf32>
    %31 = math.log1p %30 : vector<8x8xf32>
    %32 = arith.addf %26, %31 : vector<8x8xf32>
    %cst_19 = arith.constant 1.000000e-03 : f32
    %33 = vector.broadcast %cst_19 : f32 to vector<8x8xf32>
    %34 = arith.addf %32, %33 : vector<8x8xf32>
    %c0_20 = arith.constant 0 : index
    %c0_21 = arith.constant 0 : index
    %35 = vector.load %arg8[%c0_20, %c0_21] : memref<8x8xf32, #tpu.memory_space<vmem>>, vector<8x8xf32>
    tpu.vector_store %arg8[%c0_20, %c0_21], %23 {strides = array<i32>} : memref<8x8xf32, #tpu.memory_space<vmem>>, vector<8x8xf32>,
    %c0_22 = arith.constant 0 : index
    %c0_23 = arith.constant 0 : index
    %36 = vector.load %arg9[%c0_22, %c0_23] : memref<8x8xf32, #tpu.memory_space<vmem>>, vector<8x8xf32>
    tpu.vector_store %arg9[%c0_22, %c0_23], %34 {strides = array<i32>} : memref<8x8xf32, #tpu.memory_space<vmem>>, vector<8x8xf32>,
    %37 = tpu.iota {dimensions = array<i32: 0>} : vector<8x64xi32>
    %38 = tpu.iota {dimensions = array<i32: 1>} : vector<8x64xi32>
    %c9_i32 = arith.constant 9 : i32
    %39 = vector.broadcast %c9_i32 : i32 to vector<8x64xi32>
    %40 = arith.muli %37, %39 : vector<8x64xi32>
    %41 = arith.cmpi eq, %38, %40 : vector<8x64xi32>
    %42 = arith.extui %41 : vector<8x64xi1> to vector<8x64xi32>
    %43 = arith.sitofp %42 : vector<8x64xi32> to vector<8x64xf32>
    %cst_24 = arith.constant dense<0.000000e+00> : vector<8x64xf32>
    %44 = tpu.matmul %34, %43, %cst_24 {dimension_numbers = #tpu.dot_dimension_numbers<[1], [0], [0], [1], [0, 0, 1, 1], [], []>} : vector<8x8xf32>, vector<8x64xf32>, vector<8x64xf32> -> vector<8x64xf32>
    %c0_25 = arith.constant 0 : index
    %c0_26 = arith.constant 0 : index
    %45 = vector.load %arg10[%c0_25, %c0_26] : memref<8x64xf32, #tpu.memory_space<vmem>>, vector<8x64xf32>
    tpu.vector_store %arg10[%c0_25, %c0_26], %44 {strides = array<i32>} : memref<8x64xf32, #tpu.memory_space<vmem>>, vector<8x64xf32>,
    return
  }
  func.func @transform_0(%arg0: i32) -> (i32, i32) {
    %c0_i32 = arith.constant 0 : i32
    %c0_i32_0 = arith.constant 0 : i32
    return %arg0, %c0_i32 : i32, i32
  }
  func.func @transform_1(%arg0: i32) -> (i32, i32) {
    %c0_i32 = arith.constant 0 : i32
    %c0_i32_0 = arith.constant 0 : i32
    %c0_i32_1 = arith.constant 0 : i32
    return %c0_i32, %c0_i32_0 : i32, i32
  }
  func.func @transform_2(%arg0: i32) -> (i32, i32) {
    %c0_i32 = arith.constant 0 : i32
    %c0_i32_0 = arith.constant 0 : i32
    %c0_i32_1 = arith.constant 0 : i32
    return %c0_i32, %c0_i32_0 : i32, i32
  }
  func.func @transform_3(%arg0: i32) -> (i32, i32) {
    %c0_i32 = arith.constant 0 : i32
    %c0_i32_0 = arith.constant 0 : i32
    %c0_i32_1 = arith.constant 0 : i32
    return %c0_i32, %c0_i32_0 : i32, i32
  }
  func.func @transform_4(%arg0: i32) -> (i32, i32) {
    %c0_i32 = arith.constant 0 : i32
    %c0_i32_0 = arith.constant 0 : i32
    %c0_i32_1 = arith.constant 0 : i32
    return %c0_i32, %c0_i32_0 : i32, i32
  }
  func.func @transform_5(%arg0: i32) -> (i32, i32) {
    %c0_i32 = arith.constant 0 : i32
    %c0_i32_0 = arith.constant 0 : i32
    %c0_i32_1 = arith.constant 0 : i32
    return %c0_i32, %c0_i32_0 : i32, i32
  }
  func.func @transform_6(%arg0: i32) -> (i32, i32) {
    %c0_i32 = arith.constant 0 : i32
    %c0_i32_0 = arith.constant 0 : i32
    %c0_i32_1 = arith.constant 0 : i32
    return %c0_i32, %c0_i32_0 : i32, i32
  }
  func.func @transform_7(%arg0: i32) -> (i32, i32) {
    %c0_i32 = arith.constant 0 : i32
    %c0_i32_0 = arith.constant 0 : i32
    return %arg0, %c0_i32 : i32, i32
  }
  func.func @transform_8(%arg0: i32) -> (i32, i32) {
    %c0_i32 = arith.constant 0 : i32
    %c0_i32_0 = arith.constant 0 : i32
    return %arg0, %c0_i32 : i32, i32
  }
  func.func @transform_9(%arg0: i32) -> (i32, i32) {
    %c0_i32 = arith.constant 0 : i32
    %c0_i32_0 = arith.constant 0 : i32
    return %arg0, %c0_i32 : i32, i32
  }
}

</mosaic_0001>

<bundles_post_ra>
// kernel: tpu_custom_call.1
= control target key start
LH: loop header
LB: loop body
LE: loop exit
PB: predicated region body
PF: predicated region fallthrough
CT: control target
= control target key end

     0   :  { %15 = vsyncpa [#allocation3], 0  ;;  %s504_s0 = inlined_call_operand.vmem [shape: f32[8,16], index: 0, kind: input, shape index: {}]   ;;  %s505_s1 = inlined_call_operand.hbm [shape: bf16[16,32], index: 1, kind: input, shape index: {}]   ;;  %s506_s2 = inlined_call_operand.vmem [shape: f32[1,32], index: 2, kind: input, shape index: {}]   ;;  %s507_s3 = inlined_call_operand.vmem [shape: bf16[32,32], index: 3, kind: input, shape index: {}]   ;;  %s508_s4 = inlined_call_operand.vmem [shape: f32[1,32], index: 4, kind: input, shape index: {}]   ;;  %s509_s5 = inlined_call_operand.vmem [shape: bf16[32,16], index: 5, kind: input, shape index: {}]   ;;  %s510_s6 = inlined_call_operand.vmem [shape: f32[1,16], index: 6, kind: input, shape index: {}]   ;;  %s511_s7 = inlined_call_operand.hbm [shape: f32[8,8], index: 7, kind: output, shape index: {0}]   ;;  %s512_s8 = inlined_call_operand.hbm [shape: f32[8,8], index: 8, kind: output, shape index: {1}]   ;;  %s513_s9 = inlined_call_operand.hbm [shape: f32[8,64], index: 9, kind: output, shape index: {2}]  }
   0x1   :  { %16 = vsyncpa [#allocation4], 0 }
   0x2   :  { %17 = vsyncpa [#allocation7], 0  ;;  %s24_s11 = sshll.u32 %s505_s1, 4  ;;  %s407_s12 = smov [#allocation2]   ;;  %s25_s11 = int_to_ptr.hbm [resolvable:$true] %s24_s11 }
   0x3   :  { %s26_s13 = sshll.u32 %s407_s12, 4  ;;  %s408_s14 = smov 64   ;;  %s27_s13 = int_to_ptr.vmem [resolvable:$true] %s26_s13 }
   0x4   :  { %s409_s15 = smov 4  }
   0x5   :  { %32 = dma.hbm_to_vmem [thread:$0]  %s25_s11, 128, %s27_s13, [#allocation3], %s408_s14, %s408_s14, %s409_s15  }
   0x6   :  { %401 = dma.done.wait [#allocation3], 128  }
   0x7   :  { %402 = vsyncadd [#allocation3], 4294967168  ;;  %v285_v0 = vld [vmem:[#allocation2] sm:$0xff]  ;;  %vm62_vm0 = vcmask 130048   ;;  %v287_v3 = vld [vmem:[%s507_s3 + $0x8] sm:$0xff]  ;;  %vm101_vm1 = vcmask 261120   ;;  %v179_v38 = vlaneseq }
   0x8   :  { %v48_v1 = vld [vmem:[%s504_s0] sm:$0xff]  ;;  %73 = vmatpush.bf16.msra.mxu0 %v285_v0  ;;  %111 = vmatpush.bf16.msra.mxu1 %v287_v3  ;;  %v289_v11 = vld [vmem:[%s509_s5 + $0x8] sm:$0xff]  ;;  %vm172_vm2 = vcmask 64512   ;;  %v411_v42 = vmov 1.0   ;;  %s229_s30 = sshll.u32 %s512_s8, 4  ;;  %s218_s12 = sshll.u32 %s511_s7, 4  ;;  %s230_s30 = int_to_ptr.hbm [resolvable:$true] %s229_s30  ;;  %s219_s12 = int_to_ptr.hbm [resolvable:$true] %s218_s12 }
   0x9   :  { %v49_v2 = vpack.c.bf16 %v48_v1, %v48_v1  ;;  %v286_v4 = vld [vmem:[%s507_s3] sm:$0xff]  ;;  %149 = vmatpush.bf16.msra.mxu2 %v289_v11  ;;  %v180_v39 = vshrl.u32 %v179_v38, 7  ;;  %v182_v40 = vand.u32 127, %v179_v38  ;;  %s413_s13 = smov [#allocation5]   ;;  %s414_s15 = smov [#allocation8]   ;;  %vm209_vm5 = vcmask 523264  }
   0xa   :  { %v298_v5 = vld [vmem:[%s506_s2] ss:$0 sm:$0xff]  ;;  %s216_s14 = sshll.u32 %s413_s13, 4  ;;  %s238_s16 = sshll.u32 %s414_s15, 4  ;;  %s217_s14 = int_to_ptr.vmem [resolvable:$true] %s216_s14  ;;  %s239_s16 = int_to_ptr.vmem [resolvable:$true] %s238_s16 }
   0xb   :  { %263 = vmatmul.msk.bf16.vlgmr.msra.gmra.mxu0 %vm62_vm0, %v49_v2  ;;  %v288_v12 = vld [vmem:[%s509_s5] sm:$0xff]  ;;  %v183_v41 = vmul.u32 9, %v180_v39  ;;  %s412_s5 = smov [#allocation6]   ;;  %s240_s1 = sshll.u32 %s513_s9, 4  ;;  %s241_s1 = int_to_ptr.hbm [resolvable:$true] %s240_s1 }
   0xc   :  { %112 = vmatpush.bf16.msra.mxu1 %v286_v4  ;;  %v299_v13 = vld [vmem:[%s508_s4] ss:$0 sm:$0xff]  ;;  %s410_s4 = smov 120  }
   0xd   :  { %150 = vmatpush.bf16.msra.mxu2 %v288_v12  ;;  %v300_v19 = vld [vmem:[%s510_s6] ss:$0 sm:$0xff]  ;;  %vm184_vm4 = vcmp.eq.s32.totalorder %v182_v40, %v183_v41  ;;  %s227_s6 = sshll.u32 %s412_s5, 4  ;;  %s228_s6 = int_to_ptr.vmem [resolvable:$true] %s227_s6 }
   0xe   :  { %283 = vmatpush.msk.msra.mxu3 %vm184_vm4, %v411_v42 }
  0x88   :  { %v75_v6 = vpop.f32.mrf.mxu0 }
  0x89   :  { %v76_v7 = vadd.f32 %v298_v5, %v75_v6 }
  0x8b   :  { %v79_v8 = vmax.f32 %v76_v7, 0.0 }
  0x8d   :  { %v80_v9 = vpack.c.bf16 %v79_v8, %v79_v8 }
  0x8f   :  { %272 = vmatmul.msk.bf16.vlgmr.msra.gmra.mxu1 %vm101_vm1, %v80_v9 }
  0x90   :  { %v77_v10 = vpop.f32.mrf.mxu0 }
 0x10c   :  { %v114_v14 = vpop.f32.mrf.mxu1 }
 0x10d   :  { %v115_v15 = vadd.f32 %v299_v13, %v114_v14 }
 0x10f   :  { %v118_v16 = vmax.f32 %v115_v15, 0.0 }
 0x111   :  { %v119_v17 = vpack.c.bf16 %v118_v16, %v118_v16 }
 0x113   :  { %281 = vmatmul.msk.bf16.vlgmr.msra.gmra.mxu2 %vm101_vm1, %v119_v17 }
 0x114   :  { %v116_v18 = vpop.f32.mrf.mxu1 }
 0x196   :  { %v152_v20 = vpop.f32.mrf.mxu2 }
 0x197   :  { %v153_v21 = vadd.f32 %v300_v19, %v152_v20 }
 0x199   :  { %v157_v22 = vand.u32 2147483647, %v153_v21  ;;  %173 = vst.msk [vmem:[#allocation5] sm:$0xff] %vm172_vm2, %v153_v21  ;;  %v156_v34 = vmax.f32 %v153_v21, 0.0 }
 0x19a   :  { %221 = dma.vmem_to_hbm [thread:$0]  %s217_s14, 128, %s219_s12, [#allocation4]  }
 0x19b   :  { %v158_v23 = vsub.f32 0.0, %v157_v22 }
 0x19d   :  { %v159_v24 = vmul.f32 1.442695, %v158_v23 }
 0x19e   :  { %v154_v25 = vpop.f32.mrf.mxu2 }
 0x19f   :  { %301 = vpow2.f32 %v159_v24 }
 0x1a5   :  { %v302_v26 = vpop.eup %301 }
 0x1a6   :  { %v161_v27 = vadd.f32 1.0, %v302_v26  ;;  %v164_v28 = vmul.f32 -0.5, %v302_v26  ;;  %v167_v30 = vand.u32 2147483647, %v302_v26 }
 0x1a8   :  { %303 = vlog2.f32 %v161_v27  ;;  %v165_v29 = vadd.f32 1.0, %v164_v28  ;;  %vm168_vm3 = vcmp.lt.f32.partialorder %v167_v30, 0.0004427343 }
 0x1aa   :  { %v166_v33 = vmul.f32 %v302_v26, %v165_v29 }
 0x1ae   :  { %v304_v31 = vpop.eup %303 }
 0x1af   :  { %v163_v32 = vmul.f32 0.6931472, %v304_v31 }
 0x1b1   :  { %v169_v35 = vsel %vm168_vm3, %v166_v33, %v163_v32 }
 0x1b2   :  { %v170_v36 = vadd.f32 %v169_v35, %v156_v34 }
 0x1b4   :  { %v171_v37 = vadd.f32 0.001, %v170_v36 }
 0x1b6   :  { %175 = vrot.lane.b32.xlu0 %v171_v37, %s410_s4 }
 0x228   :  { %v176_v43 = vpop.permute.xlu0 %175 }
 0x229   :  { %178 = vst.msk [vmem:[#allocation6] sm:$0xff] %vm172_vm2, %v176_v43  ;;  %284 = vmatmul.msk.f32.vlgmr.msra.gmra.mxu3 %vm172_vm2, %v176_v43 }
 0x22a   :  { %232 = dma.vmem_to_hbm [thread:$0]  %s228_s6, 128, %s230_s30, [#allocation7]  }
 0x2ac   :  { %v206_v44 = vpop.f32.mrf.mxu3 }
 0x2ad   :  { %210 = vst.msk [vmem:[#allocation8] sm:$0xff] %vm209_vm5, %v206_v44 }
 0x2ae   :  { %243 = dma.vmem_to_hbm [thread:$0]  %s239_s16, 128, %s241_s1, [#allocation7]  }
 0x2af   :  { %403 = dma.done.wait [#allocation4], 128  }
 0x2b0   :  { %404 = vsyncadd [#allocation4], 4294967168 }
 0x2b1   :  { %405 = dma.done.wait [#allocation7], 256  }
 0x2b2   :  { %406 = vsyncadd [#allocation7], 4294967040 }
 0x2b3   :  { %256 = vsyncpa [#allocation3], 1 }
 0x2b4   :  { %257 = vsyncpa [#allocation4], 1 }
 0x2b5   :  { %258 = vsyncpa [#allocation7], 1 }

</bundles_post_ra>
